<compile_context>
chip_gen: v7x
topology: tpu7x:2x2x1
jax: 0.10.0
libtpu: 0.0.40
codegen_flags: <defaults>
</compile_context>

<pallas_src>
import math

import jax
import jax.numpy as jnp
from jax.experimental import pallas as pl
from jax.experimental.pallas import tpu as pltpu


HIDDEN = 50        # DenseVAE hidden width (nn.Linear(D, 50))
HIDDEN_PAD = 128   # lane-dense padded hidden width
STATE_PAD = 128    # lane-dense padded state (mu) width


def _round_up(x, m):
    return ((x + m - 1) // m) * m


def vae_encode_mu_kernel(x_ref, w1_ref, b1_ref, w2_ref, b2_ref, mu_ref):
    # x_ref : (TB, D)        bf16  (batch tile of flattened observations)
    # w1_ref: (D, 128)       bf16  (fc1 weight, zero-padded cols 50..127)
    # b1_ref: (1, 128)       f32   (fc1 bias,   zero-padded)
    # w2_ref: (128, 128)     f32   (fc21 weight, zero-padded rows/cols)
    # b2_ref: (1, 128)       f32   (fc21 bias,  zero-padded)
    # mu_ref: (TB, 128)      f32
    h = jnp.dot(x_ref[...], w1_ref[...],
                preferred_element_type=jnp.float32) + b1_ref[...]
    h = jnp.maximum(h, 0.0)                      # ReLU on the f32 accumulator
    mu = jnp.dot(h, w2_ref[...],
                 preferred_element_type=jnp.float32) + b2_ref[...]
    mu_ref[...] = mu.astype(mu_ref.dtype)


def prepare_params(w1, b1, w2, b2, compute_dtype=jnp.bfloat16):
    """One-time padding/casting of DenseVAE encoder params.

    w1: (D, 50)  b1: (1, 50)  w2: (50, S)  b2: (1, S)   [(in, out) layout]
    Returns lane-dense padded params (hidden -> 128, state -> 128); padded
    hidden columns/rows are zero so ReLU(0)+0 contributes nothing to mu.
    """
    d_in, hidden = w1.shape
    state_dim = w2.shape[1]
    w1p = (jnp.zeros((d_in, HIDDEN_PAD), jnp.float32)
           .at[:, :hidden].set(w1).astype(compute_dtype))
    b1p = jnp.zeros((1, HIDDEN_PAD), jnp.float32).at[:, :hidden].set(b1[0])
    w2p = (jnp.zeros((HIDDEN_PAD, STATE_PAD), jnp.float32)
           .at[:hidden, :state_dim].set(w2))
    b2p = jnp.zeros((1, STATE_PAD), jnp.float32).at[:, :state_dim].set(b2[0])
    return w1p, b1p, w2p, b2p, state_dim


def vae_forward(x_nchw, w1p, b1p, w2p, b2p, state_dim,
                *, compute_dtype=jnp.bfloat16):
    """VAETrainer.forward: mu = fc21(relu(fc1(flatten(x))))."""
    B = x_nchw.shape[0]
    D = math.prod(x_nchw.shape[1:])              # static; no device round-trip

    # Batch tiling: stream (TB, D) x-tiles, keep weights resident.
    if B >= 128:
        tb = 128
    else:
        tb = _round_up(max(B, 1), 8)             # f32 sublane multiple
    b_pad = _round_up(B, tb)

    x_flat = x_nchw.reshape(B, D).astype(compute_dtype)
    if b_pad != B:
        x_flat = jnp.pad(x_flat, ((0, b_pad - B), (0, 0)))

    grid = (b_pad // tb,)

    itemsize = jnp.dtype(compute_dtype).itemsize
    flops = 2 * b_pad * D * HIDDEN_PAD + 2 * b_pad * HIDDEN_PAD * STATE_PAD
    bytes_accessed = (b_pad * D * itemsize                       # x
                      + D * HIDDEN_PAD * itemsize                # w1
                      + HIDDEN_PAD * 4 + HIDDEN_PAD * STATE_PAD * 4
                      + STATE_PAD * 4                            # b1, w2, b2
                      + b_pad * STATE_PAD * 4)                   # mu out

    mu_pad = pl.pallas_call(
        vae_encode_mu_kernel,
        out_shape=jax.ShapeDtypeStruct((b_pad, STATE_PAD), jnp.float32),
        grid=grid,
        in_specs=[
            pl.BlockSpec((tb, D), lambda i: (i, 0)),        # stream x tiles
            pl.BlockSpec(w1p.shape, lambda i: (0, 0)),      # weights resident
            pl.BlockSpec(b1p.shape, lambda i: (0, 0)),
            pl.BlockSpec(w2p.shape, lambda i: (0, 0)),
            pl.BlockSpec(b2p.shape, lambda i: (0, 0)),
        ],
        out_specs=pl.BlockSpec((tb, STATE_PAD), lambda i: (i, 0)),
        compiler_params=pltpu.CompilerParams(
            dimension_semantics=("parallel",)),             # megacore on v7x
        cost_estimate=pl.CostEstimate(
            flops=flops, transcendentals=0, bytes_accessed=bytes_accessed),
    )(x_flat, w1p, b1p, w2p, b2p)

    # Un-pad: drop padded batch rows and padded state columns.
    return mu_pad[:B, :state_dim]


def init_params(key, in_dim, hidden, state_dim):
    """Deterministic synthetic params (PyTorch Linear init, stored as (in, out))."""
    k1, k2, k3, k4 = jax.random.split(key, 4)
    scale1 = 1.0 / jnp.sqrt(in_dim)
    scale2 = 1.0 / jnp.sqrt(hidden)
    w1 = jax.random.uniform(k1, (in_dim, hidden), jnp.float32, -scale1, scale1)
    b1 = jax.random.uniform(k2, (1, hidden), jnp.float32, -scale1, scale1)
    w2 = jax.random.uniform(k3, (hidden, state_dim), jnp.float32, -scale2, scale2)
    b2 = jax.random.uniform(k4, (1, state_dim), jnp.float32, -scale2, scale2)
    return w1, b1, w2, b2


if __name__ == "__main__":
    key = jax.random.PRNGKey(0)
    kx, kp = jax.random.split(key)

    # Small shapes consistent with the module: batch=2, img_shape=(3, 16, 16),
    # state_dim=2 (VAETrainer default), hidden=50 (DenseVAE).
    B, C, H, W = 2, 3, 16, 16
    state_dim = 2
    D = C * H * W

    x = jax.random.normal(kx, (B, C, H, W), jnp.float32)
    w1, b1, w2, b2 = init_params(kp, D, HIDDEN, state_dim)

    compute_dtype = jnp.bfloat16
    w1p, b1p, w2p, b2p, sd = prepare_params(w1, b1, w2, b2, compute_dtype)

    mu = vae_forward(x, w1p, b1p, w2p, b2p, sd, compute_dtype=compute_dtype)
    mu = jax.block_until_ready(mu)

    # Pure-JAX reference with the same MXU-input rounding (x, w1 in bf16; f32 acc).
    x_flat = x.reshape(B, -1)
    xr = x_flat.astype(compute_dtype).astype(jnp.float32)
    w1r = w1.astype(compute_dtype).astype(jnp.float32)
    h_ref = jnp.maximum(
        jnp.dot(xr, w1r, precision=jax.lax.Precision.HIGHEST) + b1, 0.0)
    mu_ref = jnp.dot(h_ref, w2, precision=jax.lax.Precision.HIGHEST) + b2

    assert mu.shape == (B, state_dim), mu.shape
    assert jnp.allclose(mu, mu_ref, atol=2e-2, rtol=2e-2), (
        float(jnp.max(jnp.abs(mu - mu_ref))))

    print("KERNEL_OK")
</pallas_src>

<mosaic_0001>
module attributes {stable_mosaic.version = 11 : i64} {
  func.func @vae_encode_mu_kernel(%arg0: i32, %arg1: memref<8x768xbf16, #tpu.memory_space<vmem>>, %arg2: memref<768x128xbf16, #tpu.memory_space<vmem>>, %arg3: memref<1x128xf32, #tpu.memory_space<vmem>>, %arg4: memref<128x128xf32, #tpu.memory_space<vmem>>, %arg5: memref<1x128xf32, #tpu.memory_space<vmem>>, %arg6: memref<8x128xf32, #tpu.memory_space<vmem>>) attributes {dimension_semantics = [#tpu.dimension_semantics<parallel>], iteration_bounds = array<i64: 1>, scalar_prefetch = 0 : i64, scratch_operands = 0 : i64, tpu.core_type = #tpu.core_type<tc>, window_params = [{transform_indices = @transform_0, window_bounds = array<i64: 8, 768>}, {pipeline_mode = #tpu.pipeline_mode<synchronous>, transform_indices = @transform_1, window_bounds = array<i64: 768, 128>}, {pipeline_mode = #tpu.pipeline_mode<synchronous>, transform_indices = @transform_2, window_bounds = array<i64: 1, 128>}, {pipeline_mode = #tpu.pipeline_mode<synchronous>, transform_indices = @transform_3, window_bounds = array<i64: 128, 128>}, {pipeline_mode = #tpu.pipeline_mode<synchronous>, transform_indices = @transform_4, window_bounds = array<i64: 1, 128>}, {transform_indices = @transform_5, window_bounds = array<i64: 8, 128>}]} {
    %c0 = arith.constant 0 : index
    %c0_0 = arith.constant 0 : index
    %0 = vector.load %arg1[%c0, %c0_0] : memref<8x768xbf16, #tpu.memory_space<vmem>>, vector<8x768xbf16>
    %c0_1 = arith.constant 0 : index
    %c0_2 = arith.constant 0 : index
    %1 = vector.load %arg2[%c0_1, %c0_2] : memref<768x128xbf16, #tpu.memory_space<vmem>>, vector<768x128xbf16>
    %cst = arith.constant dense<0.000000e+00> : vector<8x128xf32>
    %2 = tpu.matmul %0, %1, %cst {dimension_numbers = #tpu.dot_dimension_numbers<[1], [0], [0], [1], [0, 0, 1, 1], [], []>} : vector<8x768xbf16>, vector<768x128xbf16>, vector<8x128xf32> -> vector<8x128xf32>
    %c0_3 = arith.constant 0 : index
    %c0_4 = arith.constant 0 : index
    %3 = vector.load %arg3[%c0_3, %c0_4] : memref<1x128xf32, #tpu.memory_space<vmem>>, vector<1x128xf32>
    %4 = vector.broadcast %3 : vector<1x128xf32> to vector<8x128xf32>
    %5 = arith.addf %2, %4 : vector<8x128xf32>
    %cst_5 = arith.constant 0.000000e+00 : f32
    %6 = vector.broadcast %cst_5 : f32 to vector<8x128xf32>
    %7 = arith.maximumf %5, %6 : vector<8x128xf32>
    %c0_6 = arith.constant 0 : index
    %c0_7 = arith.constant 0 : index
    %8 = vector.load %arg4[%c0_6, %c0_7] : memref<128x128xf32, #tpu.memory_space<vmem>>, vector<128x128xf32>
    %cst_8 = arith.constant dense<0.000000e+00> : vector<8x128xf32>
    %9 = tpu.matmul %7, %8, %cst_8 {dimension_numbers = #tpu.dot_dimension_numbers<[1], [0], [0], [1], [0, 0, 1, 1], [], []>} : vector<8x128xf32>, vector<128x128xf32>, vector<8x128xf32> -> vector<8x128xf32>
    %c0_9 = arith.constant 0 : index
    %c0_10 = arith.constant 0 : index
    %10 = vector.load %arg5[%c0_9, %c0_10] : memref<1x128xf32, #tpu.memory_space<vmem>>, vector<1x128xf32>
    %11 = vector.broadcast %10 : vector<1x128xf32> to vector<8x128xf32>
    %12 = arith.addf %9, %11 : vector<8x128xf32>
    %c0_11 = arith.constant 0 : index
    %c0_12 = arith.constant 0 : index
    %13 = vector.load %arg6[%c0_11, %c0_12] : memref<8x128xf32, #tpu.memory_space<vmem>>, vector<8x128xf32>
    tpu.vector_store %arg6[%c0_11, %c0_12], %12 {strides = array<i32>} : memref<8x128xf32, #tpu.memory_space<vmem>>, vector<8x128xf32>,
    return
  }
  func.func @transform_0(%arg0: i32) -> (i32, i32) {
    %c0_i32 = arith.constant 0 : i32
    %c0_i32_0 = arith.constant 0 : i32
    return %arg0, %c0_i32 : i32, i32
  }
  func.func @transform_1(%arg0: i32) -> (i32, i32) {
    %c0_i32 = arith.constant 0 : i32
    %c0_i32_0 = arith.constant 0 : i32
    %c0_i32_1 = arith.constant 0 : i32
    return %c0_i32, %c0_i32_0 : i32, i32
  }
  func.func @transform_2(%arg0: i32) -> (i32, i32) {
    %c0_i32 = arith.constant 0 : i32
    %c0_i32_0 = arith.constant 0 : i32
    %c0_i32_1 = arith.constant 0 : i32
    return %c0_i32, %c0_i32_0 : i32, i32
  }
  func.func @transform_3(%arg0: i32) -> (i32, i32) {
    %c0_i32 = arith.constant 0 : i32
    %c0_i32_0 = arith.constant 0 : i32
    %c0_i32_1 = arith.constant 0 : i32
    return %c0_i32, %c0_i32_0 : i32, i32
  }
  func.func @transform_4(%arg0: i32) -> (i32, i32) {
    %c0_i32 = arith.constant 0 : i32
    %c0_i32_0 = arith.constant 0 : i32
    %c0_i32_1 = arith.constant 0 : i32
    return %c0_i32, %c0_i32_0 : i32, i32
  }
  func.func @transform_5(%arg0: i32) -> (i32, i32) {
    %c0_i32 = arith.constant 0 : i32
    %c0_i32_0 = arith.constant 0 : i32
    return %arg0, %c0_i32 : i32, i32
  }
}

</mosaic_0001>

<bundles_post_ra>
// kernel: tpu_custom_call.1
= control target key start
LH: loop header
LB: loop body
LE: loop exit
PB: predicated region body
PF: predicated region fallthrough
CT: control target
= control target key end

     0   :  { %10 = vsyncpa [#allocation3], 0  ;;  %s1159_s0 = inlined_call_operand.hbm [shape: bf16[8,768], index: 0, kind: input, shape index: {}]   ;;  %s1160_s1 = inlined_call_operand.hbm [shape: bf16[768,128], index: 1, kind: input, shape index: {}]   ;;  %s1161_s2 = inlined_call_operand.vmem [shape: f32[1,128], index: 2, kind: input, shape index: {}]   ;;  %s1162_s3 = inlined_call_operand.hbm [shape: f32[128,128], index: 3, kind: input, shape index: {}]   ;;  %s1163_s4 = inlined_call_operand.vmem [shape: f32[1,128], index: 4, kind: input, shape index: {}]   ;;  %s1164_s5 = inlined_call_operand.hbm [shape: f32[8,128], index: 5, kind: output, shape index: {}]  }
   0x1   :  { %11 = vsyncpa [#allocation6], 0 }
   0x2   :  { %12 = vsyncpa [#allocation4], 0  ;;  %s1064_s18 = smov [#allocation5]   ;;  %s970_s22 = scalar_lea.hbm %s1160_s1, 6144 }
   0x3   :  { %s28_s19 = sshll.u32 %s1064_s18, 4  ;;  %p971_p0 = scmp.ne.s32.totalorder %s1160_s1, %s970_s22  ;;  %s29_s19 = int_to_ptr.vmem [resolvable:$true] %s28_s19 }
   0x4   :  { %p974_p1 = scmp.lt.u32.totalorder %s970_s22, %s1160_s1 }
   0x6   :  { %p976_p2 = pnand %p974_p1, %p971_p0 }
   0x8   :  { %979 = shalt.err (!%p976_p2)
}
   0x9   :  { %s980_s27 = scalar_lea.vmem %s29_s19, 6144  ;;  %p985_p4 = scmp.lt.s32.totalorder %s29_s19, %s29_s19 }
   0xa   :  { %p981_p3 = scmp.ne.s32.totalorder %s29_s19, %s980_s27  ;;  %p986_p5 = scmp.lt.s32.totalorder %s980_s27, %s980_s27 }
   0xc   :  { %p987_p6 = por %p986_p5, %p985_p4 }
   0xe   :  { %p988_p7 = pnand %p987_p6, %p981_p3 }
  0x10   :  { %991 = shalt.err (!%p988_p7)
}
  0x11   :  { %s1065_s28 = smov 64   ;;  %s1066_s29 = smov 4  }
  0x12   :  { %34 = dma.hbm_to_vmem [thread:$0]  %s1160_s1, 6144, %s29_s19, [#allocation6], %s1065_s28, %s1065_s28, %s1066_s29  }
  0x13   :  { %s1067_s7 = smov [#allocation2]   ;;  %s1068_s9 = smov [#allocation7]  }
  0x14   :  { %s19_s8 = sshll.u32 %s1067_s7, 4  ;;  %s42_s10 = sshll.u32 %s1068_s9, 4  ;;  %s20_s8 = int_to_ptr.vmem [resolvable:$true] %s19_s8  ;;  %s43_s10 = int_to_ptr.vmem [resolvable:$true] %s42_s10 }
  0x15   :  { %s992_s13 = scalar_lea.hbm %s1159_s0, 384 }
  0x16   :  { %p993_p8 = scmp.ne.s32.totalorder %s1159_s0, %s992_s13  ;;  %p996_p9 = scmp.lt.u32.totalorder %s992_s13, %s1159_s0 }
  0x18   :  { %p998_p10 = pnand %p996_p9, %p993_p8 }
  0x1a   :  { %1001 = shalt.err (!%p998_p10)
}
  0x1b   :  { %s1002_s1 = scalar_lea.vmem %s20_s8, 384  ;;  %p1007_p12 = scmp.lt.s32.totalorder %s20_s8, %s20_s8 }
  0x1c   :  { %p1003_p11 = scmp.ne.s32.totalorder %s20_s8, %s1002_s1  ;;  %p1008_p13 = scmp.lt.s32.totalorder %s1002_s1, %s1002_s1 }
  0x1e   :  { %p1009_p0 = por %p1008_p13, %p1007_p12 }
  0x20   :  { %p1010_p1 = pnand %p1009_p0, %p1003_p11 }
  0x22   :  { %1013 = shalt.err (!%p1010_p1)
}
  0x23   :  { %22 = dma.hbm_to_vmem [thread:$0]  %s1159_s0, 384, %s20_s8, [#allocation3]  }
  0x24   :  { %s1014_s22 = scalar_lea.hbm %s1162_s3, 2048 }
  0x25   :  { %p1015_p2 = scmp.ne.s32.totalorder %s1162_s3, %s1014_s22  ;;  %p1018_p3 = scmp.lt.u32.totalorder %s1014_s22, %s1162_s3 }
  0x27   :  { %p1020_p4 = pnand %p1018_p3, %p1015_p2 }
  0x29   :  { %1023 = shalt.err (!%p1020_p4)
}
  0x2a   :  { %s1024_s27 = scalar_lea.vmem %s43_s10, 2048  ;;  %p1029_p6 = scmp.lt.s32.totalorder %s43_s10, %s43_s10 }
  0x2b   :  { %p1025_p5 = scmp.ne.s32.totalorder %s43_s10, %s1024_s27  ;;  %p1030_p7 = scmp.lt.s32.totalorder %s1024_s27, %s1024_s27 }
  0x2d   :  { %p1031_p8 = por %p1030_p7, %p1029_p6 }
  0x2f   :  { %p1032_p9 = pnand %p1031_p8, %p1025_p5 }
  0x31   :  { %1035 = shalt.err (!%p1032_p9)
}
  0x32   :  { %s1069_s0 = smov 128   ;;  %s1070_s28 = smov 8  }
  0x33   :  { %48 = dma.hbm_to_vmem [thread:$0]  %s1162_s3, 2048, %s43_s10, [#allocation6], %s1069_s0, %s1069_s0, %s1070_s28  }
  0x34   :  { %1058 = dma.done.wait [#allocation3], 384  }
  0x35   :  { %1059 = vsyncadd [#allocation3], 4294966912 }
  0x36   :  { %1060 = dma.done.wait [#allocation6], 8192  }
  0x37   :  { %1061 = vsyncadd [#allocation6], 4294959104  ;;  %v916_v0 = vld [vmem:[#allocation5 + $0x40] sm:$0xff]   ;;  %v920_v4 = vld [vmem:[#allocation5 + $0x48] sm:$0xff]   ;;  %v1071_v60 = vmov 0.0|0.0   ;;  %vm1072_vm0 = vmmov 0  }
  0x38   :  { %v917_v1 = vld [vmem:[#allocation5] sm:$0xff]   ;;  %763 = vmatprep.subr.bf16.mxu0 %v916_v0  ;;  %v921_v5 = vld [vmem:[#allocation5 + $0x8] sm:$0xff]   ;;  %v924_v8 = vld [vmem:[#allocation5 + $0x50] sm:$0xff]   ;;  %s1074_s8 = smov [#allocation8]  }
  0x39   :  { %v918_v2 = vld [vmem:[#allocation5 + $0xc0] sm:$0xff]   ;;  %764 = vmatpush3.bf16.msra.mxu0 %v917_v1  ;;  %v922_v6 = vld [vmem:[#allocation5 + $0xc8] sm:$0xff]   ;;  %v925_v9 = vld [vmem:[#allocation5 + $0x10] sm:$0xff]   ;;  %s697_s9 = sshll.u32 %s1074_s8, 4  ;;  %s698_s9 = int_to_ptr.vmem [resolvable:$true] %s697_s9 }
  0x3a   :  { %v919_v3 = vld [vmem:[#allocation5 + $0x80] sm:$0xff]   ;;  %785 = vmatprep.subr.bf16.mxu1 %v918_v2  ;;  %765 = vmatprep.subr.bf16.mxu0 %v920_v4  ;;  %v923_v7 = vld [vmem:[#allocation5 + $0x88] sm:$0xff]   ;;  %v926_v10 = vld [vmem:[#allocation5 + $0xd0] sm:$0xff]   ;;  %s1036_s10 = scalar_lea.vmem %s698_s9, 128  ;;  %p1041_p11 = scmp.lt.s32.totalorder %s698_s9, %s698_s9 }
  0x3b   :  { %786 = vmatpush3.bf16.msra.mxu1 %v919_v3  ;;  %v927_v11 = vld [vmem:[#allocation5 + $0x90] sm:$0xff]   ;;  %v928_v12 = vld [vmem:[#allocation5 + $0x58] sm:$0xff]   ;;  %v932_v16 = vld [vmem:[#allocation5 + $0x60] sm:$0xff]   ;;  %p1037_p10 = scmp.ne.s32.totalorder %s698_s9, %s1036_s10  ;;  %p1042_p12 = scmp.lt.s32.totalorder %s1036_s10, %s1036_s10 }
  0x3c   :  { %787 = vmatprep.subr.bf16.mxu1 %v922_v6  ;;  %v929_v13 = vld [vmem:[#allocation5 + $0x18] sm:$0xff]   ;;  %v933_v17 = vld [vmem:[#allocation5 + $0x20] sm:$0xff]   ;;  %v936_v20 = vld [vmem:[#allocation5 + $0x68] sm:$0xff]  }
  0x3d   :  { %766 = vmatpush3.bf16.msra.mxu0 %v921_v5  ;;  %v930_v14 = vld [vmem:[#allocation5 + $0xd8] sm:$0xff]   ;;  %v934_v18 = vld [vmem:[#allocation5 + $0xe0] sm:$0xff]   ;;  %v937_v21 = vld [vmem:[#allocation5 + $0x28] sm:$0xff]   ;;  %p1043_p13 = por %p1042_p12, %p1041_p11 }
  0x3e   :  { %767 = vmatprep.subr.bf16.mxu0 %v924_v8  ;;  %v931_v15 = vld [vmem:[#allocation5 + $0x98] sm:$0xff]   ;;  %v935_v19 = vld [vmem:[#allocation5 + $0xa0] sm:$0xff]   ;;  %v938_v22 = vld [vmem:[#allocation5 + $0xe8] sm:$0xff]  }
  0x3f   :  { %788 = vmatpush3.bf16.msra.mxu1 %v923_v7  ;;  %v939_v23 = vld [vmem:[#allocation5 + $0xa8] sm:$0xff]   ;;  %v940_v24 = vld [vmem:[#allocation5 + $0x70] sm:$0xff]   ;;  %v944_v28 = vld [vmem:[#allocation5 + $0x78] sm:$0xff]   ;;  %p1044_p0 = pnand %p1043_p13, %p1037_p10 }
  0x40   :  { %789 = vmatprep.subr.bf16.mxu1 %v926_v10  ;;  %v941_v25 = vld [vmem:[#allocation5 + $0x30] sm:$0xff]   ;;  %v945_v29 = vld [vmem:[#allocation5 + $0x38] sm:$0xff]   ;;  %v61_v31 = vld [vmem:[#allocation2] sm:$0xff] }
  0x41   :  { %768 = vmatpush3.bf16.msra.mxu0 %v925_v9  ;;  %v942_v26 = vld [vmem:[#allocation5 + $0xf0] sm:$0xff]   ;;  %v946_v30 = vld [vmem:[#allocation5 + $0xf8] sm:$0xff]   ;;  %v708_v32 = vcombine.low %v61_v31, %v61_v31  ;;  %v709_v33 = vcombine.high %v61_v31, %v61_v31  ;;  %v950_v35 = vld [vmem:[#allocation5 + $0x140] sm:$0xff]  }
  0x42   :  { %769 = vmatprep.subr.bf16.mxu0 %v928_v12  ;;  %v943_v27 = vld [vmem:[#allocation5 + $0xb0] sm:$0xff]   ;;  %v949_v34 = vld [vmem:[#allocation5 + $0xb8] sm:$0xff]   ;;  %v953_v39 = vld [vmem:[#allocation5 + $0x100] sm:$0xff]  }
  0x43   :  { %790 = vmatpush3.bf16.msra.mxu1 %v927_v11  ;;  %v62_v36 = vld [vmem:[#allocation2 + $0x8] sm:$0xff]  ;;  %508 = vmatprep.mubr.bf16.mxu0 %v709_v33  ;;  %v954_v40 = vld [vmem:[#allocation5 + $0x148] sm:$0xff]   ;;  %v958_v44 = vld [vmem:[#allocation5 + $0x158] sm:$0xff]  }
  0x44   :  { %791 = vmatprep.subr.bf16.mxu1 %v930_v14  ;;  %v710_v37 = vcombine.low %v62_v36, %v62_v36  ;;  %v711_v38 = vcombine.high %v62_v36, %v62_v36  ;;  %v955_v41 = vld [vmem:[#allocation5 + $0x108] sm:$0xff]   ;;  %v956_v42 = vld [vmem:[#allocation5 + $0x150] sm:$0xff]   ;;  %v959_v45 = vld [vmem:[#allocation5 + $0x118] sm:$0xff]  }
  0x45   :  { %770 = vmatpush3.bf16.msra.mxu0 %v929_v13  ;;  %v957_v43 = vld [vmem:[#allocation5 + $0x110] sm:$0xff]   ;;  %v960_v46 = vld [vmem:[#allocation5 + $0x160] sm:$0xff]   ;;  %v63_v48 = vld [vmem:[#allocation2 + $0x10] sm:$0xff] }
  0x46   :  { %771 = vmatprep.subr.bf16.mxu0 %v932_v16  ;;  %548 = vmatprep.mubr.bf16.mxu1 %v711_v38  ;;  %v961_v47 = vld [vmem:[#allocation5 + $0x120] sm:$0xff]   ;;  %v962_v49 = vld [vmem:[#allocation5 + $0x168] sm:$0xff]   ;;  %v713_v50 = vcombine.high %v63_v48, %v63_v48  ;;  %v964_v52 = vld [vmem:[#allocation5 + $0x170] sm:$0xff]   ;;  %v712_v56 = vcombine.low %v63_v48, %v63_v48 }
  0x47   :  { %792 = vmatpush3.bf16.msra.mxu1 %v931_v15  ;;  %v963_v51 = vld [vmem:[#allocation5 + $0x128] sm:$0xff]   ;;  %v965_v53 = vld [vmem:[#allocation5 + $0x130] sm:$0xff]   ;;  %v966_v54 = vld [vmem:[#allocation5 + $0x178] sm:$0xff]  }
  0x48   :  { %793 = vmatprep.subr.bf16.mxu1 %v934_v18  ;;  %v967_v55 = vld [vmem:[#allocation5 + $0x138] sm:$0xff]   ;;  %v597_v57 = vld [vmem:[#allocation7] sm:$0xff]  ;;  %v598_v58 = vld [vmem:[#allocation7 + $0x8] sm:$0xff]  ;;  %v1073_v18 = vmov 0.0  }
  0x49   :  { %772 = vmatpush3.bf16.msra.mxu0 %v933_v17  ;;  %v599_v59 = vld [vmem:[#allocation7 + $0x10] sm:$0xff]  ;;  %v882_v61 = vpack.c.bf16 %v598_v58, %v597_v57  ;;  %v600_v62 = vld [vmem:[#allocation7 + $0x18] sm:$0xff]  ;;  %v601_v0 = vld [vmem:[#allocation7 + $0x20] sm:$0xff] }
  0x4a   :  { %773 = vmatprep.subr.bf16.mxu0 %v936_v20  ;;  %v885_v63 = vpack.c.bf16 %v600_v62, %v599_v59  ;;  %v602_v1 = vld [vmem:[#allocation7 + $0x28] sm:$0xff]  ;;  %v603_v3 = vld [vmem:[#allocation7 + $0x30] sm:$0xff]  ;;  %v604_v4 = vld [vmem:[#allocation7 + $0x38] sm:$0xff] }
  0x4b   :  { %794 = vmatpush3.bf16.msra.mxu1 %v935_v19  ;;  %v888_v2 = vpack.c.bf16 %v602_v1, %v601_v0  ;;  %v891_v5 = vpack.c.bf16 %v604_v4, %v603_v3  ;;  %v605_v6 = vld [vmem:[#allocation7 + $0x40] sm:$0xff]  ;;  %v606_v7 = vld [vmem:[#allocation7 + $0x48] sm:$0xff]  ;;  %v607_v9 = vld [vmem:[#allocation7 + $0x50] sm:$0xff] }
  0x4c   :  { %795 = vmatprep.subr.bf16.mxu1 %v938_v22  ;;  %v894_v8 = vpack.c.bf16 %v606_v7, %v605_v6  ;;  %v608_v10 = vld [vmem:[#allocation7 + $0x58] sm:$0xff]  ;;  %v609_v12 = vld [vmem:[#allocation7 + $0x60] sm:$0xff]  ;;  %v610_v13 = vld [vmem:[#allocation7 + $0x68] sm:$0xff] }
  0x4d   :  { %774 = vmatpush3.bf16.msra.mxu0 %v937_v21  ;;  %v897_v11 = vpack.c.bf16 %v608_v10, %v607_v9  ;;  %v900_v14 = vpack.c.bf16 %v610_v13, %v609_v12  ;;  %v611_v15 = vld [vmem:[#allocation7 + $0x70] sm:$0xff]  ;;  %v612_v16 = vld [vmem:[#allocation7 + $0x78] sm:$0xff]  ;;  %v707_v20 = vld [vmem:[%s1161_s2] ss:$0 sm:$0xff] }
  0x4e   :  { %775 = vmatprep.subr.bf16.mxu0 %v940_v24  ;;  %v903_v17 = vpack.c.bf16 %v612_v16, %v611_v15 }
  0x4f   :  { %796 = vmatpush3.bf16.msra.mxu1 %v939_v23 }
  0x50   :  { %797 = vmatprep.subr.bf16.mxu1 %v942_v26 }
  0x51   :  { %776 = vmatpush3.bf16.msra.mxu0 %v941_v25 }
  0x52   :  { %777 = vmatprep.subr.bf16.mxu0 %v944_v28 }
  0x53   :  { %798 = vmatpush3.bf16.msra.mxu1 %v943_v27 }
  0x54   :  { %799 = vmatprep.subr.bf16.mxu1 %v946_v30 }
  0x55   :  { %778 = vmatpush3.bf16.msra.mxu0 %v945_v29 }
  0x56   :  { %807 = vmatprep.subr.bf16.mxu0 %v950_v35 }
  0x57   :  { %800 = vmatpush3.bf16.msra.mxu1 %v949_v34 }
  0x58   :  { %509 = vmatmul.mubr.bf16.vlgmr.msra.gmra.mrb[0].mxu0 %v708_v32  ;;  %881 = vmatprep.subr.bf16.mxu1 %v1071_v60 }
  0x59   :  { %808 = vmatpush3.bf16.msra.mxu0 %v953_v39  ;;  %588 = vmatprep.mubr.bf16.mxu0 %v713_v50  ;;  %v762_v39 = vld [vmem:[%s1163_s4] ss:$0 sm:$0xff] }
  0x5a   :  { %549 = vmatmul.mubr.bf16.vlgmr.msra.gmra.mrb[0].mxu1 %v710_v37  ;;  %809 = vmatprep.subr.bf16.mxu0 %v954_v40 }
  0x5b   :  { %883 = vmatpush3.bf16.msra.mxu1 %v882_v61  ;;  %878 = vmatprep.mubr.msk.f32.mxu1 %vm1072_vm0, %v1073_v18 }
  0x5c   :  { %884 = vmatprep.subr.bf16.mxu1 %v1071_v60 }
  0x5d   :  { %810 = vmatpush3.bf16.msra.mxu0 %v955_v41 }
  0x5e   :  { %811 = vmatprep.subr.bf16.mxu0 %v956_v42 }
  0x5f   :  { %886 = vmatpush3.bf16.msra.mxu1 %v885_v63 }
  0x60   :  { %887 = vmatprep.subr.bf16.mxu1 %v1071_v60 }
  0x61   :  { %812 = vmatpush3.bf16.msra.mxu0 %v957_v43 }
  0x62   :  { %813 = vmatprep.subr.bf16.mxu0 %v958_v44 }
  0x63   :  { %889 = vmatpush3.bf16.msra.mxu1 %v888_v2 }
  0x64   :  { %890 = vmatprep.subr.bf16.mxu1 %v1071_v60 }
  0x65   :  { %814 = vmatpush3.bf16.msra.mxu0 %v959_v45 }
  0x66   :  { %815 = vmatprep.subr.bf16.mxu0 %v960_v46 }
  0x67   :  { %892 = vmatpush3.bf16.msra.mxu1 %v891_v5 }
  0x68   :  { %893 = vmatprep.subr.bf16.mxu1 %v1071_v60 }
  0x69   :  { %816 = vmatpush3.bf16.msra.mxu0 %v961_v47 }
  0x6a   :  { %817 = vmatprep.subr.bf16.mxu0 %v962_v49 }
  0x6b   :  { %895 = vmatpush3.bf16.msra.mxu1 %v894_v8 }
  0x6c   :  { %896 = vmatprep.subr.bf16.mxu1 %v1071_v60 }
  0x6d   :  { %818 = vmatpush3.bf16.msra.mxu0 %v963_v51 }
  0x6e   :  { %819 = vmatprep.subr.bf16.mxu0 %v964_v52 }
  0x6f   :  { %898 = vmatpush3.bf16.msra.mxu1 %v897_v11 }
  0x70   :  { %899 = vmatprep.subr.bf16.mxu1 %v1071_v60 }
  0x71   :  { %820 = vmatpush3.bf16.msra.mxu0 %v965_v53 }
  0x72   :  { %821 = vmatprep.subr.bf16.mxu0 %v966_v54 }
  0x73   :  { %901 = vmatpush3.bf16.msra.mxu1 %v900_v14 }
  0x74   :  { %902 = vmatprep.subr.bf16.mxu1 %v1071_v60 }
  0x75   :  { %822 = vmatpush3.bf16.msra.mxu0 %v967_v55 }
  0x77   :  { %904 = vmatpush3.bf16.msra.mxu1 %v903_v17 }
  0x78   :  { %589 = vmatmul.mubr.bf16.vlgmr.msra.gmra.mrb[4].mxu0 %v712_v56 }
 0x12b   :  { %v779_v19 = vpop.f32.mrb[0].mxu0 }
 0x12c   :  { %v780_v21 = vpop.f32.mrb[1].mxu0 }
 0x12d   :  { %v781_v22 = vadd.f32 %v780_v21, %v779_v19  ;;  %v782_v23 = vpop.f32.mrb[2].mxu0  ;;  %v801_v24 = vpop.f32.mrb[0].mxu1 }
 0x12e   :  { %v783_v25 = vpop.f32.mrb[3].mxu0  ;;  %v802_v26 = vpop.f32.mrb[1].mxu1 }
 0x12f   :  { %v511_v27 = vadd.f32 %v781_v22, %v707_v20  ;;  %v803_v28 = vadd.f32 %v802_v26, %v801_v24  ;;  %v804_v29 = vpop.f32.mrb[2].mxu1 }
 0x130   :  { %v805_v30 = vpop.f32.mrb[3].mxu1 }
 0x131   :  { %v551_v31 = vadd.f32 %v803_v28, %v511_v27 }
 0x14b   :  { %v823_v32 = vpop.f32.mrb[4].mxu0 }
 0x14c   :  { %v824_v33 = vpop.f32.mrb[5].mxu0 }
 0x14d   :  { %v825_v34 = vadd.f32 %v824_v33, %v823_v32  ;;  %v826_v35 = vpop.f32.mrb[6].mxu0 }
 0x14e   :  { %v827_v36 = vpop.f32.mrb[7].mxu0 }
 0x14f   :  { %v591_v37 = vadd.f32 %v825_v34, %v551_v31 }
 0x151   :  { %v596_v38 = vmax.f32 %v591_v37, 0.0 }
 0x153   :  { %879 = vmatmul.mubr.f32.vlgmr.msra.gmra.mrb[4].mxu1 %v596_v38 }
 0x226   :  { %v686_v40 = vpop.f32.mrb[4].mxu1 }
 0x227   :  { %v687_v41 = vadd.f32 %v762_v39, %v686_v40  ;;  %v880_v42 = vpop.f32.mrb[5].mxu1 }
 0x229   :  { %690 = vst [vmem:[#allocation8] sm:$0xff] %v687_v41 }
 0x22a   :  { %1047 = shalt.err (!%p1044_p0)
}
 0x22b   :  { %s1048_s13 = scalar_lea.hbm %s1164_s5, 128 }
 0x22c   :  { %p1049_p1 = scmp.ne.s32.totalorder %s1164_s5, %s1048_s13  ;;  %p1052_p2 = scmp.lt.u32.totalorder %s1048_s13, %s1164_s5 }
 0x22e   :  { %p1054_p3 = pnand %p1052_p2, %p1049_p1 }
 0x230   :  { %1057 = shalt.err (!%p1054_p3)
}
 0x231   :  { %700 = dma.vmem_to_hbm [thread:$0]  %s698_s9, 128, %s1164_s5, [#allocation4]  }
 0x232   :  { %1062 = dma.done.wait [#allocation4], 128  }
 0x233   :  { %1063 = vsyncadd [#allocation4], 4294967168 }
 0x234   :  { %704 = vsyncpa [#allocation3], 1 }
 0x235   :  { %705 = vsyncpa [#allocation6], 1 }
 0x236   :  { %706 = vsyncpa [#allocation4], 1 }

</bundles_post_ra>
